<compile_context>
chip_gen: v7x
topology: tpu7x:2x2x1
jax: 0.10.0
libtpu: 0.0.40
codegen_flags: <defaults>
</compile_context>

<pallas_src>
import functools

import jax
import jax.numpy as jnp
from jax.experimental import pallas as pl
from jax.experimental.pallas import tpu as pltpu

EPS = 1e-5


# ---------------- Fused forward kernel (whole network in one pallas_call) ----------------

def _fnn_fused_kernel(num_hidden, x_ref, *refs):
    """refs layout:
         per hidden layer i (num_hidden of them): w, b, gamma, beta
         final MLP linear:                        w, b
         linear2:                                 w, b
         last ref:                                o_ref (output)
    """
    o_ref = refs[-1]
    h = x_ref[...]

    idx = 0
    # (Linear -> BatchNorm1d(train) -> ReLU) x num_hidden, fully unrolled.
    for _ in range(num_hidden):
        w, b, g, beta = refs[idx], refs[idx + 1], refs[idx + 2], refs[idx + 3]
        idx += 4
        # y = h @ W + b   (MXU, f32 accumulate)
        y = jnp.dot(h, w[...], preferred_element_type=jnp.float32) + b[...]
        # BatchNorm1d training-mode stats over the (full) batch axis, single pass over y.
        mean = jnp.mean(y, axis=0, keepdims=True)
        var = jnp.maximum(jnp.mean(y * y, axis=0, keepdims=True) - mean * mean, 0.0)
        # Fold gamma into the scale: one FMA-shaped normalize+affine pass, then ReLU.
        scale = g[...] * jax.lax.rsqrt(var + EPS)     # rsqrt -> EUP slot
        shift = beta[...] - mean * scale
        h = jnp.maximum(y * scale + shift, 0.0)

    # MLP final Linear (no BN / ReLU).
    w, b = refs[idx], refs[idx + 1]
    idx += 2
    h = jnp.dot(h, w[...], preferred_element_type=jnp.float32) + b[...]

    # FNN tail: linear2(ReLU(h)), fused.
    w2, b2 = refs[idx], refs[idx + 1]
    h = jnp.maximum(h, 0.0)
    o_ref[...] = jnp.dot(h, w2[...], preferred_element_type=jnp.float32) + b2[...]


def fnn_forward(params, x):
    num_layers = len(params["linears"])
    num_hidden = num_layers - 1

    args = [x]
    for i in range(num_hidden):
        w, b = params["linears"][i]
        g, beta = params["bn"][i]
        args += [w, b, g, beta]
    w_last, b_last = params["linears"][num_layers - 1]
    args += [w_last, b_last]
    w2, b2 = params["linear2"]
    args += [w2, b2]

    batch = x.shape[0]
    out_dim = w2.shape[1]

    kernel = functools.partial(_fnn_fused_kernel, num_hidden)
    return pl.pallas_call(
        kernel,
        out_shape=jax.ShapeDtypeStruct((batch, out_dim), jnp.float32),
        # Everything fits comfortably in VMEM on v5e/v6e/v7x; whole-array blocks, no grid.
        in_specs=[pl.BlockSpec(memory_space=pltpu.MemorySpace.VMEM)] * len(args),
        out_specs=pl.BlockSpec(memory_space=pltpu.MemorySpace.VMEM),
    )(*args)


# ---------------- Parameter initialization (deterministic, PyTorch-like) ----------------

def _init_linear(key, in_dim, out_dim):
    # PyTorch nn.Linear default: U(-1/sqrt(in), 1/sqrt(in)) for weight and bias.
    kw, kb = jax.random.split(key)
    bound = 1.0 / jnp.sqrt(jnp.float32(in_dim))
    w = jax.random.uniform(kw, (in_dim, out_dim), jnp.float32, -bound, bound)
    b = jax.random.uniform(kb, (1, out_dim), jnp.float32, -bound, bound)
    return w, b


def init_fnn_params(key, in_dim, hidden_dim, out_dim, num_layers):
    keys = jax.random.split(key, num_layers + 1)
    params = {"linears": [], "bn": []}
    dims = [in_dim] + [hidden_dim] * (num_layers - 1) + [out_dim]
    for i in range(num_layers):
        params["linears"].append(_init_linear(keys[i], dims[i], dims[i + 1]))
    for _ in range(num_layers - 1):
        # BatchNorm1d default init: gamma=1, beta=0
        params["bn"].append((jnp.ones((1, hidden_dim), jnp.float32),
                             jnp.zeros((1, hidden_dim), jnp.float32)))
    params["linear2"] = _init_linear(keys[num_layers], out_dim, out_dim)
    return params


if __name__ == "__main__":
    in_dim, hidden_dim, out_dim, num_layers = 16, 32, 16, 3
    batch = 8

    key = jax.random.PRNGKey(0)
    kx, kp = jax.random.split(key)
    x = jax.random.normal(kx, (batch, in_dim), jnp.float32)
    params = init_fnn_params(kp, in_dim, hidden_dim, out_dim, num_layers)

    fwd = jax.jit(fnn_forward)
    out = fwd(params, x)
    jax.block_until_ready(out)
    assert out.shape == (batch, out_dim)
    assert bool(jnp.all(jnp.isfinite(out)))
    print("KERNEL_OK")
</pallas_src>

<mosaic_0001>
module attributes {stable_mosaic.version = 11 : i64} {
  func.func @_fnn_fused_kernel(%arg0: memref<8x16xf32, #tpu.memory_space<vmem>>, %arg1: memref<16x32xf32, #tpu.memory_space<vmem>>, %arg2: memref<1x32xf32, #tpu.memory_space<vmem>>, %arg3: memref<1x32xf32, #tpu.memory_space<vmem>>, %arg4: memref<1x32xf32, #tpu.memory_space<vmem>>, %arg5: memref<32x32xf32, #tpu.memory_space<vmem>>, %arg6: memref<1x32xf32, #tpu.memory_space<vmem>>, %arg7: memref<1x32xf32, #tpu.memory_space<vmem>>, %arg8: memref<1x32xf32, #tpu.memory_space<vmem>>, %arg9: memref<32x16xf32, #tpu.memory_space<vmem>>, %arg10: memref<1x16xf32, #tpu.memory_space<vmem>>, %arg11: memref<16x16xf32, #tpu.memory_space<vmem>>, %arg12: memref<1x16xf32, #tpu.memory_space<vmem>>, %arg13: memref<8x16xf32, #tpu.memory_space<vmem>>) attributes {dimension_semantics = [], scalar_prefetch = 0 : i64, scratch_operands = 0 : i64, tpu.core_type = #tpu.core_type<tc>} {
    %c0 = arith.constant 0 : index
    %c0_0 = arith.constant 0 : index
    %0 = vector.load %arg0[%c0, %c0_0] : memref<8x16xf32, #tpu.memory_space<vmem>>, vector<8x16xf32>
    %c0_1 = arith.constant 0 : index
    %c0_2 = arith.constant 0 : index
    %1 = vector.load %arg1[%c0_1, %c0_2] : memref<16x32xf32, #tpu.memory_space<vmem>>, vector<16x32xf32>
    %cst = arith.constant dense<0.000000e+00> : vector<8x32xf32>
    %2 = tpu.matmul %0, %1, %cst {dimension_numbers = #tpu.dot_dimension_numbers<[1], [0], [0], [1], [0, 0, 1, 1], [], []>} : vector<8x16xf32>, vector<16x32xf32>, vector<8x32xf32> -> vector<8x32xf32>
    %c0_3 = arith.constant 0 : index
    %c0_4 = arith.constant 0 : index
    %3 = vector.load %arg2[%c0_3, %c0_4] : memref<1x32xf32, #tpu.memory_space<vmem>>, vector<1x32xf32>
    %4 = vector.broadcast %3 : vector<1x32xf32> to vector<8x32xf32>
    %5 = arith.addf %2, %4 : vector<8x32xf32>
    %cst_5 = arith.constant dense<0.000000e+00> : vector<32xf32>
    %6 = vector.multi_reduction <add>, %5, %cst_5 [0] : vector<8x32xf32> to vector<32xf32>
    %7 = vector.shape_cast %6 : vector<32xf32> to vector<1x32xf32>
    %cst_6 = arith.constant 8.000000e+00 : f32
    %8 = vector.broadcast %cst_6 : f32 to vector<1x32xf32>
    %9 = arith.divf %7, %8 : vector<1x32xf32>
    %10 = arith.mulf %5, %5 : vector<8x32xf32>
    %cst_7 = arith.constant dense<0.000000e+00> : vector<32xf32>
    %11 = vector.multi_reduction <add>, %10, %cst_7 [0] : vector<8x32xf32> to vector<32xf32>
    %12 = vector.shape_cast %11 : vector<32xf32> to vector<1x32xf32>
    %cst_8 = arith.constant 8.000000e+00 : f32
    %13 = vector.broadcast %cst_8 : f32 to vector<1x32xf32>
    %14 = arith.divf %12, %13 : vector<1x32xf32>
    %15 = arith.mulf %9, %9 : vector<1x32xf32>
    %16 = arith.subf %14, %15 : vector<1x32xf32>
    %cst_9 = arith.constant 0.000000e+00 : f32
    %17 = vector.broadcast %cst_9 : f32 to vector<1x32xf32>
    %18 = arith.maximumf %16, %17 : vector<1x32xf32>
    %c0_10 = arith.constant 0 : index
    %c0_11 = arith.constant 0 : index
    %19 = vector.load %arg3[%c0_10, %c0_11] : memref<1x32xf32, #tpu.memory_space<vmem>>, vector<1x32xf32>
    %cst_12 = arith.constant 9.99999974E-6 : f32
    %20 = vector.broadcast %cst_12 : f32 to vector<1x32xf32>
    %21 = arith.addf %18, %20 : vector<1x32xf32>
    %22 = math.rsqrt %21 : vector<1x32xf32>
    %23 = arith.mulf %19, %22 : vector<1x32xf32>
    %c0_13 = arith.constant 0 : index
    %c0_14 = arith.constant 0 : index
    %24 = vector.load %arg4[%c0_13, %c0_14] : memref<1x32xf32, #tpu.memory_space<vmem>>, vector<1x32xf32>
    %25 = arith.mulf %9, %23 : vector<1x32xf32>
    %26 = arith.subf %24, %25 : vector<1x32xf32>
    %27 = vector.broadcast %23 : vector<1x32xf32> to vector<8x32xf32>
    %28 = arith.mulf %5, %27 : vector<8x32xf32>
    %29 = vector.broadcast %26 : vector<1x32xf32> to vector<8x32xf32>
    %30 = arith.addf %28, %29 : vector<8x32xf32>
    %cst_15 = arith.constant 0.000000e+00 : f32
    %31 = vector.broadcast %cst_15 : f32 to vector<8x32xf32>
    %32 = arith.maximumf %30, %31 : vector<8x32xf32>
    %c0_16 = arith.constant 0 : index
    %c0_17 = arith.constant 0 : index
    %33 = vector.load %arg5[%c0_16, %c0_17] : memref<32x32xf32, #tpu.memory_space<vmem>>, vector<32x32xf32>
    %cst_18 = arith.constant dense<0.000000e+00> : vector<8x32xf32>
    %34 = tpu.matmul %32, %33, %cst_18 {dimension_numbers = #tpu.dot_dimension_numbers<[1], [0], [0], [1], [0, 0, 1, 1], [], []>} : vector<8x32xf32>, vector<32x32xf32>, vector<8x32xf32> -> vector<8x32xf32>
    %c0_19 = arith.constant 0 : index
    %c0_20 = arith.constant 0 : index
    %35 = vector.load %arg6[%c0_19, %c0_20] : memref<1x32xf32, #tpu.memory_space<vmem>>, vector<1x32xf32>
    %36 = vector.broadcast %35 : vector<1x32xf32> to vector<8x32xf32>
    %37 = arith.addf %34, %36 : vector<8x32xf32>
    %cst_21 = arith.constant dense<0.000000e+00> : vector<32xf32>
    %38 = vector.multi_reduction <add>, %37, %cst_21 [0] : vector<8x32xf32> to vector<32xf32>
    %39 = vector.shape_cast %38 : vector<32xf32> to vector<1x32xf32>
    %cst_22 = arith.constant 8.000000e+00 : f32
    %40 = vector.broadcast %cst_22 : f32 to vector<1x32xf32>
    %41 = arith.divf %39, %40 : vector<1x32xf32>
    %42 = arith.mulf %37, %37 : vector<8x32xf32>
    %cst_23 = arith.constant dense<0.000000e+00> : vector<32xf32>
    %43 = vector.multi_reduction <add>, %42, %cst_23 [0] : vector<8x32xf32> to vector<32xf32>
    %44 = vector.shape_cast %43 : vector<32xf32> to vector<1x32xf32>
    %cst_24 = arith.constant 8.000000e+00 : f32
    %45 = vector.broadcast %cst_24 : f32 to vector<1x32xf32>
    %46 = arith.divf %44, %45 : vector<1x32xf32>
    %47 = arith.mulf %41, %41 : vector<1x32xf32>
    %48 = arith.subf %46, %47 : vector<1x32xf32>
    %cst_25 = arith.constant 0.000000e+00 : f32
    %49 = vector.broadcast %cst_25 : f32 to vector<1x32xf32>
    %50 = arith.maximumf %48, %49 : vector<1x32xf32>
    %c0_26 = arith.constant 0 : index
    %c0_27 = arith.constant 0 : index
    %51 = vector.load %arg7[%c0_26, %c0_27] : memref<1x32xf32, #tpu.memory_space<vmem>>, vector<1x32xf32>
    %cst_28 = arith.constant 9.99999974E-6 : f32
    %52 = vector.broadcast %cst_28 : f32 to vector<1x32xf32>
    %53 = arith.addf %50, %52 : vector<1x32xf32>
    %54 = math.rsqrt %53 : vector<1x32xf32>
    %55 = arith.mulf %51, %54 : vector<1x32xf32>
    %c0_29 = arith.constant 0 : index
    %c0_30 = arith.constant 0 : index
    %56 = vector.load %arg8[%c0_29, %c0_30] : memref<1x32xf32, #tpu.memory_space<vmem>>, vector<1x32xf32>
    %57 = arith.mulf %41, %55 : vector<1x32xf32>
    %58 = arith.subf %56, %57 : vector<1x32xf32>
    %59 = vector.broadcast %55 : vector<1x32xf32> to vector<8x32xf32>
    %60 = arith.mulf %37, %59 : vector<8x32xf32>
    %61 = vector.broadcast %58 : vector<1x32xf32> to vector<8x32xf32>
    %62 = arith.addf %60, %61 : vector<8x32xf32>
    %cst_31 = arith.constant 0.000000e+00 : f32
    %63 = vector.broadcast %cst_31 : f32 to vector<8x32xf32>
    %64 = arith.maximumf %62, %63 : vector<8x32xf32>
    %c0_32 = arith.constant 0 : index
    %c0_33 = arith.constant 0 : index
    %65 = vector.load %arg9[%c0_32, %c0_33] : memref<32x16xf32, #tpu.memory_space<vmem>>, vector<32x16xf32>
    %cst_34 = arith.constant dense<0.000000e+00> : vector<8x16xf32>
    %66 = tpu.matmul %64, %65, %cst_34 {dimension_numbers = #tpu.dot_dimension_numbers<[1], [0], [0], [1], [0, 0, 1, 1], [], []>} : vector<8x32xf32>, vector<32x16xf32>, vector<8x16xf32> -> vector<8x16xf32>
    %c0_35 = arith.constant 0 : index
    %c0_36 = arith.constant 0 : index
    %67 = vector.load %arg10[%c0_35, %c0_36] : memref<1x16xf32, #tpu.memory_space<vmem>>, vector<1x16xf32>
    %68 = vector.broadcast %67 : vector<1x16xf32> to vector<8x16xf32>
    %69 = arith.addf %66, %68 : vector<8x16xf32>
    %cst_37 = arith.constant 0.000000e+00 : f32
    %70 = vector.broadcast %cst_37 : f32 to vector<8x16xf32>
    %71 = arith.maximumf %69, %70 : vector<8x16xf32>
    %c0_38 = arith.constant 0 : index
    %c0_39 = arith.constant 0 : index
    %72 = vector.load %arg11[%c0_38, %c0_39] : memref<16x16xf32, #tpu.memory_space<vmem>>, vector<16x16xf32>
    %cst_40 = arith.constant dense<0.000000e+00> : vector<8x16xf32>
    %73 = tpu.matmul %71, %72, %cst_40 {dimension_numbers = #tpu.dot_dimension_numbers<[1], [0], [0], [1], [0, 0, 1, 1], [], []>} : vector<8x16xf32>, vector<16x16xf32>, vector<8x16xf32> -> vector<8x16xf32>
    %c0_41 = arith.constant 0 : index
    %c0_42 = arith.constant 0 : index
    %74 = vector.load %arg12[%c0_41, %c0_42] : memref<1x16xf32, #tpu.memory_space<vmem>>, vector<1x16xf32>
    %75 = vector.broadcast %74 : vector<1x16xf32> to vector<8x16xf32>
    %76 = arith.addf %73, %75 : vector<8x16xf32>
    %c0_43 = arith.constant 0 : index
    %c0_44 = arith.constant 0 : index
    %77 = vector.load %arg13[%c0_43, %c0_44] : memref<8x16xf32, #tpu.memory_space<vmem>>, vector<8x16xf32>
    tpu.vector_store %arg13[%c0_43, %c0_44], %76 {strides = array<i32>} : memref<8x16xf32, #tpu.memory_space<vmem>>, vector<8x16xf32>,
    return
  }
}

</mosaic_0001>

<bundles_post_ra>
// kernel: fnn_forward.1
= control target key start
LH: loop header
LB: loop body
LE: loop exit
PB: predicated region body
PF: predicated region fallthrough
CT: control target
= control target key end

     0   :  { %18 = vsyncpa [#allocation3], 0  ;;  %s862_s0 = inlined_call_operand.vmem [shape: f32[8,16], index: 0, kind: input, shape index: {}]   ;;  %s863_s1 = inlined_call_operand.vmem [shape: f32[16,32], index: 1, kind: input, shape index: {}]   ;;  %s864_s2 = inlined_call_operand.vmem [shape: f32[1,32], index: 2, kind: input, shape index: {}]   ;;  %s865_s3 = inlined_call_operand.vmem [shape: f32[1,32], index: 3, kind: input, shape index: {}]   ;;  %s866_s4 = inlined_call_operand.vmem [shape: f32[1,32], index: 4, kind: input, shape index: {}]   ;;  %s867_s5 = inlined_call_operand.vmem [shape: f32[32,32], index: 5, kind: input, shape index: {}]   ;;  %s868_s6 = inlined_call_operand.vmem [shape: f32[1,32], index: 6, kind: input, shape index: {}]   ;;  %s869_s7 = inlined_call_operand.vmem [shape: f32[1,32], index: 7, kind: input, shape index: {}]   ;;  %s870_s8 = inlined_call_operand.vmem [shape: f32[1,32], index: 8, kind: input, shape index: {}]   ;;  %s871_s9 = inlined_call_operand.vmem [shape: f32[32,16], index: 9, kind: input, shape index: {}]   ;;  %s872_s10 = inlined_call_operand.vmem [shape: f32[1,16], index: 10, kind: input, shape index: {}]   ;;  %s873_s11 = inlined_call_operand.hbm [shape: f32[16,16], index: 11, kind: input, shape index: {}]   ;;  %s874_s12 = inlined_call_operand.hbm [shape: f32[1,16], index: 12, kind: input, shape index: {}]   ;;  %s875_s13 = inlined_call_operand.hbm [shape: f32[8,16], index: 13, kind: output, shape index: {}]  }
   0x1   :  { %19 = vsyncpa [#allocation6], 0 }
   0x2   :  { %20 = vsyncpa [#allocation4], 0  ;;  %s671_s25 = smov [#allocation2]   ;;  %s599_s29 = scalar_lea.hbm %s873_s11, 256 }
   0x3   :  { %s48_s26 = sshll.u32 %s671_s25, 4  ;;  %p600_p0 = scmp.ne.s32.totalorder %s873_s11, %s599_s29  ;;  %s49_s26 = int_to_ptr.vmem [resolvable:$true] %s48_s26 }
   0x4   :  { %p603_p1 = scmp.lt.u32.totalorder %s599_s29, %s873_s11 }
   0x6   :  { %p605_p2 = pnand %p603_p1, %p600_p0 }
   0x8   :  { %608 = shalt.err (!%p605_p2)
}
   0x9   :  { %s609_s17 = scalar_lea.vmem %s49_s26, 256  ;;  %p614_p4 = scmp.lt.s32.totalorder %s49_s26, %s49_s26 }
   0xa   :  { %p610_p3 = scmp.ne.s32.totalorder %s49_s26, %s609_s17  ;;  %p615_p5 = scmp.lt.s32.totalorder %s609_s17, %s609_s17 }
   0xc   :  { %p616_p6 = por %p615_p5, %p614_p4 }
   0xe   :  { %p617_p7 = pnand %p616_p6, %p610_p3 }
  0x10   :  { %620 = shalt.err (!%p617_p7)
}
  0x11   :  { %s672_s18 = smov 128   ;;  %s673_s19 = smov 8  }
  0x12   :  { %54 = dma.hbm_to_vmem [thread:$0]  %s873_s11, 256, %s49_s26, [#allocation3], %s672_s18, %s672_s18, %s673_s19  }
  0x13   :  { %s674_s22 = smov [#allocation5]   ;;  %s621_s27 = scalar_lea.hbm %s874_s12, 16 }
  0x14   :  { %s61_s23 = sshll.u32 %s674_s22, 4  ;;  %p622_p8 = scmp.ne.s32.totalorder %s874_s12, %s621_s27  ;;  %s62_s23 = int_to_ptr.vmem [resolvable:$true] %s61_s23 }
  0x15   :  { %p625_p9 = scmp.lt.u32.totalorder %s621_s27, %s874_s12 }
  0x17   :  { %p627_p10 = pnand %p625_p9, %p622_p8 }
  0x19   :  { %630 = shalt.err (!%p627_p10)
}
  0x1a   :  { %s631_s15 = scalar_lea.vmem %s62_s23, 16  ;;  %s635_s11 = scalar_lea.vmem %s62_s23, 32 }
  0x1b   :  { %p632_p11 = scmp.ne.s32.totalorder %s62_s23, %s631_s15  ;;  %p636_p12 = scmp.lt.s32.totalorder %s62_s23, %s62_s23 }
  0x1c   :  { %p637_p13 = scmp.lt.s32.totalorder %s635_s11, %s631_s15 }
  0x1e   :  { %p638_p0 = por %p637_p13, %p636_p12 }
  0x20   :  { %p639_p1 = pnand %p638_p0, %p632_p11 }
  0x22   :  { %642 = shalt.err (!%p639_p1)
}
  0x23   :  { %64 = dma.hbm_to_vmem [thread:$0]  %s874_s12, 16, %s62_s23, [#allocation6]  }
  0x24   :  { %665 = dma.done.wait [#allocation3], 256  }
  0x25   :  { %666 = vsyncadd [#allocation3], 4294967040 }
  0x26   :  { %667 = dma.done.wait [#allocation6], 16  }
  0x27   :  { %668 = vsyncadd [#allocation6], 4294967280  ;;  %v675_v0 = vmov 0.0|0.0   ;;  %vm676_vm0 = vmmov 0   ;;  %v677_v1 = vmov 0.0   ;;  %v72_v2 = vld [vmem:[%s863_s1] sm:$0xff]  ;;  %v185_v37 = vlaneseq }
  0x28   :  { %569 = vmatprep.subr.bf16.mxu0 %v675_v0  ;;  %537 = vmatprep.mubr.msk.f32.mxu0 %vm676_vm0, %v677_v1  ;;  %v73_v3 = vld [vmem:[%s863_s1 + $0x8] sm:$0xff]  ;;  %v71_v5 = vld [vmem:[%s862_s0] sm:$0xff]  ;;  %vm81_vm1 = vcmask 130048   ;;  %v201_v9 = vld [vmem:[%s867_s5 + $0x10] sm:$0xff]  ;;  %vm155_vm2 = vcmask 261120  }
  0x29   :  { %572 = vmatprep.subr.bf16.mxu1 %v675_v0  ;;  %548 = vmatprep.mubr.msk.f32.mxu1 %vm676_vm0, %v677_v1  ;;  %v570_v4 = vpack.c.bf16 %v73_v3, %v72_v2  ;;  %v199_v6 = vld [vmem:[%s867_s5] sm:$0xff]  ;;  %v200_v7 = vld [vmem:[%s867_s5 + $0x8] sm:$0xff]  ;;  %v202_v10 = vld [vmem:[%s867_s5 + $0x18] sm:$0xff]  ;;  %v186_v38 = vshrl.u32 %v185_v37, 7 }
  0x2a   :  { %v573_v8 = vpack.c.bf16 %v200_v7, %v199_v6  ;;  %v576_v11 = vpack.c.bf16 %v202_v10, %v201_v9  ;;  %v509_v12 = vld [vmem:[%s864_s2] ss:$0 sm:$0xff]  ;;  %v326_v52 = vld [vmem:[%s871_s9 + $0x8] sm:$0xff]  ;;  %v327_v54 = vld [vmem:[%s871_s9 + $0x10] sm:$0xff] }
  0x2b   :  { %571 = vmatpush3.bf16.msra.mxu0 %v570_v4  ;;  %v177_v39 = vld [vmem:[%s865_s3] sm:$0x1]  ;;  %v187_v40 = vsub.s32 0, %v186_v38  ;;  %v328_v55 = vld [vmem:[%s871_s9 + $0x18] sm:$0xff]  ;;  %v515_v37 = vld [vmem:[#allocation5] ss:$0 sm:$0xff] }
  0x2c   :  { %578 = vmatprep.subr.bf16.mxu0 %v675_v0  ;;  %574 = vmatpush3.bf16.msra.mxu1 %v573_v8  ;;  %v181_v43 = vld [vmem:[%s866_s4] sm:$0x1]  ;;  %v582_v56 = vpack.c.bf16 %v328_v55, %v327_v54 }
  0x2d   :  { %575 = vmatprep.subr.bf16.mxu1 %v675_v0  ;;  %v325_v51 = vld [vmem:[%s871_s9] sm:$0xff] }
  0x2e   :  { %538 = vmatmul.mubr.msk.f32.vlgmr.msra.gmra.mrb[0].mxu0 %vm81_vm1, %v71_v5  ;;  %v579_v53 = vpack.c.bf16 %v326_v52, %v325_v51  ;;  %v511_v57 = vld [vmem:[%s868_s6] ss:$0 sm:$0xff] }
  0x2f   :  { %559 = vmatprep.mubr.msk.f32.mxu0 %vm676_vm0, %v677_v1 }
  0x30   :  { %577 = vmatpush3.bf16.msra.mxu1 %v576_v11  ;;  %580 = vmatpush3.bf16.msra.mxu0 %v579_v53 }
  0x31   :  { %584 = vmatprep.subr.bf16.mxu1 %v675_v0  ;;  %581 = vmatprep.subr.bf16.mxu0 %v675_v0 }
  0x34   :  { %583 = vmatpush3.bf16.msra.mxu0 %v582_v56 }
 0x101   :  { %v151_v13 = vpop.f32.mrb[0].mxu0 }
 0x102   :  { %v152_v14 = vadd.f32 %v509_v12, %v151_v13  ;;  %v539_v15 = vpop.f32.mrb[1].mxu0 }
 0x104   :  { %v156_v16 = vsel %vm155_vm2, %v152_v14, 0.0  ;;  %v165_v17 = vmul.f32 %v152_v14, %v152_v14 }
 0x105   :  { %v157_v18 = vrot.slane %v156_v16, 4 }
 0x106   :  { %v166_v19 = vsel %vm155_vm2, %v165_v17, 0.0 }
 0x107   :  { %v158_v20 = vadd.f32 %v157_v18, %v156_v16  ;;  %v167_v21 = vrot.slane %v166_v19, 4  ;;  %v303_v18 = vld [vmem:[%s869_s7] sm:$0x1] }
 0x109   :  { %v159_v22 = vrot.slane %v158_v20, 2  ;;  %v168_v23 = vadd.f32 %v167_v21, %v166_v19  ;;  %v307_v21 = vld [vmem:[%s870_s8] sm:$0x1]  ;;  %s678_s8 = smov [#allocation7]  }
 0x10a   :  { %s499_s24 = sshll.u32 %s678_s8, 4  ;;  %s500_s24 = int_to_ptr.vmem [resolvable:$true] %s499_s24 }
 0x10b   :  { %v160_v24 = vadd.f32 %v159_v22, %v158_v20  ;;  %v169_v25 = vrot.slane %v168_v23, 2  ;;  %s643_s1 = scalar_lea.vmem %s500_s24, 128  ;;  %p648_p3 = scmp.lt.s32.totalorder %s500_s24, %s500_s24 }
 0x10c   :  { %p644_p2 = scmp.ne.s32.totalorder %s500_s24, %s643_s1  ;;  %p649_p4 = scmp.lt.s32.totalorder %s643_s1, %s643_s1 }
 0x10d   :  { %v161_v26 = vrot.slane %v160_v24, 1  ;;  %v170_v27 = vadd.f32 %v169_v25, %v168_v23 }
 0x10e   :  { %p650_p5 = por %p649_p4, %p648_p3 }
 0x10f   :  { %v162_v28 = vadd.f32 %v161_v26, %v160_v24  ;;  %v171_v29 = vrot.slane %v170_v27, 1 }
 0x110   :  { %p651_p6 = pnand %p650_p5, %p644_p2 }
 0x111   :  { %v164_v30 = vmul.f32 0.125, %v162_v28  ;;  %v172_v31 = vadd.f32 %v171_v29, %v170_v27  ;;  %v410_v29 = vld [vmem:[#allocation2] sm:$0xff] }
 0x113   :  { %v173_v32 = vmul.f32 0.125, %v172_v31  ;;  %v174_v33 = vmul.f32 %v164_v30, %v164_v30 }
 0x115   :  { %v175_v34 = vsub.f32 %v173_v32, %v174_v33  ;;  %v513_v32 = vld [vmem:[%s872_s10] ss:$0 sm:$0xff] }
 0x117   :  { %v176_v35 = vmax.f32 %v175_v34, 0.0 }
 0x119   :  { %v178_v36 = vadd.f32 1e-05, %v176_v35 }
 0x11b   :  { %595 = vrsqrt.f32 %v178_v36 }
 0x125   :  { %v596_v41 = vpop.eup %595 }
 0x126   :  { %v180_v42 = vmul.f32 %v596_v41, %v177_v39 }
 0x128   :  { %v182_v44 = vmul.f32 %v180_v42, %v164_v30  ;;  %v188_v45 = vrot.slane %v180_v42, %v187_v40  ;;  %v411_v30 = vld [vmem:[#allocation2 + $0x8] sm:$0xff] }
 0x129   :  { %v585_v31 = vpack.c.bf16 %v411_v30, %v410_v29 }
 0x12a   :  { %v183_v46 = vsub.f32 %v181_v43, %v182_v44  ;;  %v190_v47 = vmul.f32 %v188_v45, %v152_v14 }
 0x12c   :  { %v195_v48 = vrot.slane %v183_v46, %v187_v40 }
 0x12e   :  { %v197_v49 = vadd.f32 %v195_v48, %v190_v47 }
 0x130   :  { %v198_v50 = vmax.f32 %v197_v49, 0.0 }
 0x132   :  { %549 = vmatmul.mubr.msk.f32.vlgmr.msra.gmra.mrb[0].mxu1 %vm155_vm2, %v198_v50 }
 0x133   :  { %566 = vmatprep.mubr.msk.f32.mxu1 %vm676_vm0, %v677_v1  ;;  %586 = vmatpush3.bf16.msra.mxu1 %v585_v31 }
 0x205   :  { %v279_v58 = vpop.f32.mrb[0].mxu1 }
 0x206   :  { %v280_v59 = vadd.f32 %v511_v57, %v279_v58  ;;  %v550_v60 = vpop.f32.mrb[1].mxu1 }
 0x208   :  { %v283_v61 = vsel %vm155_vm2, %v280_v59, 0.0  ;;  %v291_v62 = vmul.f32 %v280_v59, %v280_v59 }
 0x209   :  { %v284_v63 = vrot.slane %v283_v61, 4 }
 0x20a   :  { %v292_v0 = vsel %vm155_vm2, %v291_v62, 0.0 }
 0x20b   :  { %v285_v1 = vadd.f32 %v284_v63, %v283_v61  ;;  %v293_v2 = vrot.slane %v292_v0, 4 }
 0x20d   :  { %v286_v3 = vrot.slane %v285_v1, 2  ;;  %v294_v4 = vadd.f32 %v293_v2, %v292_v0 }
 0x20f   :  { %v287_v5 = vadd.f32 %v286_v3, %v285_v1  ;;  %v295_v6 = vrot.slane %v294_v4, 2 }
 0x211   :  { %v288_v7 = vrot.slane %v287_v5, 1  ;;  %v296_v8 = vadd.f32 %v295_v6, %v294_v4 }
 0x213   :  { %v289_v9 = vadd.f32 %v288_v7, %v287_v5  ;;  %v297_v10 = vrot.slane %v296_v8, 1 }
 0x215   :  { %v290_v11 = vmul.f32 0.125, %v289_v9  ;;  %v298_v12 = vadd.f32 %v297_v10, %v296_v8 }
 0x217   :  { %v299_v13 = vmul.f32 0.125, %v298_v12  ;;  %v300_v14 = vmul.f32 %v290_v11, %v290_v11 }
 0x219   :  { %v301_v15 = vsub.f32 %v299_v13, %v300_v14 }
 0x21b   :  { %v302_v16 = vmax.f32 %v301_v15, 0.0 }
 0x21d   :  { %v304_v17 = vadd.f32 1e-05, %v302_v16 }
 0x21f   :  { %597 = vrsqrt.f32 %v304_v17 }
 0x229   :  { %v598_v19 = vpop.eup %597 }
 0x22a   :  { %v306_v20 = vmul.f32 %v598_v19, %v303_v18 }
 0x22c   :  { %v308_v22 = vmul.f32 %v306_v20, %v290_v11  ;;  %v314_v23 = vrot.slane %v306_v20, %v187_v40 }
 0x22e   :  { %v309_v24 = vsub.f32 %v307_v21, %v308_v22  ;;  %v316_v25 = vmul.f32 %v314_v23, %v280_v59 }
 0x230   :  { %v321_v26 = vrot.slane %v309_v24, %v187_v40 }
 0x232   :  { %v323_v27 = vadd.f32 %v321_v26, %v316_v25 }
 0x234   :  { %v324_v28 = vmax.f32 %v323_v27, 0.0 }
 0x236   :  { %560 = vmatmul.mubr.msk.f32.vlgmr.msra.gmra.mrb[2].mxu0 %vm155_vm2, %v324_v28 }
 0x309   :  { %v405_v33 = vpop.f32.mrb[2].mxu0 }
 0x30a   :  { %v406_v34 = vadd.f32 %v513_v32, %v405_v33  ;;  %v561_v35 = vpop.f32.mrb[3].mxu0 }
 0x30c   :  { %v409_v36 = vmax.f32 %v406_v34, 0.0 }
 0x30e   :  { %567 = vmatmul.mubr.msk.f32.vlgmr.msra.gmra.mrb[2].mxu1 %vm81_vm1, %v409_v36 }
 0x3e1   :  { %v488_v38 = vpop.f32.mrb[2].mxu1 }
 0x3e2   :  { %v489_v39 = vadd.f32 %v515_v37, %v488_v38  ;;  %v568_v40 = vpop.f32.mrb[3].mxu1 }
 0x3e4   :  { %492 = vst.msk [vmem:[#allocation7] sm:$0xff] %vm81_vm1, %v489_v39 }
 0x3e5   :  { %654 = shalt.err (!%p651_p6)
}
 0x3e6   :  { %s655_s25 = scalar_lea.hbm %s875_s13, 128 }
 0x3e7   :  { %p656_p7 = scmp.ne.s32.totalorder %s875_s13, %s655_s25  ;;  %p659_p8 = scmp.lt.u32.totalorder %s655_s25, %s875_s13 }
 0x3e9   :  { %p661_p9 = pnand %p659_p8, %p656_p7 }
 0x3eb   :  { %664 = shalt.err (!%p661_p9)
}
 0x3ec   :  { %502 = dma.vmem_to_hbm [thread:$0]  %s500_s24, 128, %s875_s13, [#allocation4]  }
 0x3ed   :  { %669 = dma.done.wait [#allocation4], 128  }
 0x3ee   :  { %670 = vsyncadd [#allocation4], 4294967168 }
 0x3ef   :  { %506 = vsyncpa [#allocation3], 1 }
 0x3f0   :  { %507 = vsyncpa [#allocation6], 1 }
 0x3f1   :  { %508 = vsyncpa [#allocation4], 1 }

</bundles_post_ra>
